<compile_context>
chip_gen: v5e
topology: v5e:2x2
jax: 0.10.0
libtpu: 0.0.40
codegen_flags: <defaults>
</compile_context>

<pallas_src>
import functools

import jax
import jax.numpy as jnp
from jax import lax
from jax.experimental import pallas as pl
from jax.experimental.pallas import tpu as pltpu


# ------------------------------- Helpers -------------------------------

def _round_up(x, m):
    return (x + m - 1) // m * m


def _pick_batch_tile(B, Sq, Sk, nhd_pad, nout_pad, itemsize,
                     target_rows=256, scratch_budget=16 << 20):
    """Largest batch tile (divisor of B) that (a) gives the projection GEMMs at least
    `target_rows` MXU rows when possible and (b) keeps the Q/K/V/acc scratch under
    `scratch_budget` bytes (so the kernel also fits v7x's 64 MiB VMEM)."""
    divisors = [d for d in range(1, B + 1) if B % d == 0]
    bt = next((d for d in divisors if d * Sq >= target_rows), divisors[-1])

    def scratch_bytes(d):
        return (d * (Sq + 2 * Sk) * nhd_pad * itemsize   # Q/K/V projection scratch
                + d * Sq * nout_pad * 4)                  # f32 output accumulator

    while bt > 1 and scratch_bytes(bt) > scratch_budget:
        bt = max(d for d in divisors if d < bt)
    return bt


def _vmem_limit_bytes():
    """~75% of physical VMEM (96 MiB on v5e/v6e, 48 MiB on v7x), with a safe fallback."""
    try:
        cap = pltpu.get_tpu_info().vmem_capacity_bytes
    except Exception:
        cap = 64 << 20
    return max(32 << 20, min(int(0.75 * cap), 100 << 20))


# ----------------------------- Fused Pallas kernel -----------------------------

def _fused_mha_kernel(q_ref, k_ref, v_ref,
                      wq_ref, bq_ref, wk_ref, bk_ref, wv_ref, bv_ref,
                      wo_ref, bo_ref, o_ref,
                      q_s, k_s, v_s, acc_s,
                      *, num_heads, head_dim, compute_dtype):
    """One batch tile (Bt batch elements, all heads) per grid step."""
    Bt, Sq, Hin = q_ref.shape
    _, Sk, _ = k_ref.shape
    NHDp = q_s.shape[-1]
    Noutp = o_ref.shape[-1]
    D = head_dim
    cd = compute_dtype

    # --- Q/K/V projections on flattened (Bt*S, Hin) row blocks (fills the MXU M dim).
    #     Inputs are cast to compute_dtype ONCE per block; bias add / accumulation and all
    #     softmax work stay f32 (v5e-safe: bf16 only touches MXU operands).
    q2 = q_ref[...].reshape(Bt * Sq, Hin).astype(cd)
    k2 = k_ref[...].reshape(Bt * Sk, Hin).astype(cd)
    v2 = v_ref[...].reshape(Bt * Sk, Hin).astype(cd)

    # 1/sqrt(D) is already folded into Wq / bq by the wrapper.
    q_s[...] = (jnp.dot(q2, wq_ref[...], preferred_element_type=jnp.float32)
                + bq_ref[...]).astype(cd).reshape(Bt, Sq, NHDp)
    k_s[...] = (jnp.dot(k2, wk_ref[...], preferred_element_type=jnp.float32)
                + bk_ref[...]).astype(cd).reshape(Bt, Sk, NHDp)
    v_s[...] = (jnp.dot(v2, wv_ref[...], preferred_element_type=jnp.float32)
                + bv_ref[...]).astype(cd).reshape(Bt, Sk, NHDp)

    acc_s[...] = jnp.zeros_like(acc_s)

    # --- Per-head attention, batched over the Bt batch elements of this tile.
    #     Q/K/V live in VMEM scratch, so each iteration only materializes one head's
    #     operands (bounded vreg pressure).  NH is small -> static unroll (equivalent to
    #     lax.fori_loop(unroll=True)); slice starts are compile-time constants.
    for h in range(num_heads):
        lo = h * D
        qh = q_s[:, :, lo:lo + D]                       # (Bt, Sq, D)
        kh = k_s[:, :, lo:lo + D]                       # (Bt, Sk, D)
        vh = v_s[:, :, lo:lo + D]                       # (Bt, Sk, D)

        # Scores: contract the head dim directly (no explicit K transpose / relayout).
        s = jnp.einsum('bqd,bkd->bqk', qh, kh,
                       preferred_element_type=jnp.float32)           # (Bt, Sq, Sk)

        # Numerically stable softmax in f32; reciprocal routed to the (otherwise idle) EUP.
        s = s - jnp.max(s, axis=-1, keepdims=True)
        p = jnp.exp(s)
        p = p * pl.reciprocal(jnp.sum(p, axis=-1, keepdims=True), approx=True)

        oh = jnp.einsum('bqk,bkd->bqd', p.astype(cd), vh,
                        preferred_element_type=jnp.float32)           # (Bt, Sq, D)

        # Fold this head's slice of the output projection into the f32 accumulator:
        # the per-head context never hits HBM, and the Wo GEMM sees M = Bt*Sq rows.
        wo_h = wo_ref[lo:lo + D, :]                                   # (D, Noutp)
        acc_s[...] += jnp.dot(oh.astype(cd).reshape(Bt * Sq, D), wo_h,
                              preferred_element_type=jnp.float32)

    # Single lane-dense store of the padded (Bt, Sq, Noutp) output block.
    o_ref[...] = (acc_s[...] + bo_ref[...]).reshape(Bt, Sq, Noutp).astype(o_ref.dtype)


# ------------------------------ Wrapper ------------------------------

def multi_head_attention(params, query, key, value, num_heads, attention_hidden,
                         *, compute_dtype=jnp.float32):
    """
    query: (B, Sq, Hin)   key/value: (B, Sk, Hin)   ->   (B, Sq, output_dim)

    compute_dtype=jnp.bfloat16 makes the MXU operands bf16 (f32 accumulation and f32
    softmax are kept) — recommended on v6e / v7x; use jnp.float32 for tight comparisons.
    """
    B, Sq, Hin = query.shape
    _, Sk, _ = key.shape
    D = attention_hidden
    NH = num_heads
    NHD = NH * D
    Nout = params["Wo"].shape[1]

    # Pad lane dimensions to multiples of 128 (zero columns) -> lane-dense scratch writes
    # and a lane-dense output store; the pad is sliced off outside the kernel.
    NHDp = _round_up(NHD, 128)
    Noutp = _round_up(Nout, 128)
    inv_rootD = 1.0 / (float(D) ** 0.5)

    def pad_cols(w, cols):
        return jnp.pad(w, ((0, 0), (0, cols - w.shape[1])))

    # Fold the attention scale into the Q projection (one-time, weight-side).
    wq = pad_cols(params["Wq"] * inv_rootD, NHDp).astype(compute_dtype)
    wk = pad_cols(params["Wk"], NHDp).astype(compute_dtype)
    wv = pad_cols(params["Wv"], NHDp).astype(compute_dtype)
    wo = pad_cols(params["Wo"], Noutp).astype(compute_dtype)
    bq = pad_cols((params["bq"] * inv_rootD).reshape(1, NHD), NHDp)   # biases stay f32
    bk = pad_cols(params["bk"].reshape(1, NHD), NHDp)
    bv = pad_cols(params["bv"].reshape(1, NHD), NHDp)
    bo = pad_cols(params["bo"].reshape(1, Nout), Noutp)

    itemsize = jnp.dtype(compute_dtype).itemsize
    Bt = _pick_batch_tile(B, Sq, Sk, NHDp, Noutp, itemsize)
    grid = (B // Bt,)

    kernel = functools.partial(_fused_mha_kernel, num_heads=NH, head_dim=D,
                               compute_dtype=compute_dtype)
    wmap = lambda i: (0, 0)    # weights / biases: same full block every grid step

    out = pl.pallas_call(
        kernel,
        out_shape=jax.ShapeDtypeStruct((B, Sq, Noutp), jnp.float32),
        grid_spec=pltpu.PrefetchScalarGridSpec(
            num_scalar_prefetch=0,
            grid=grid,
            in_specs=[
                pl.BlockSpec((Bt, Sq, Hin), lambda i: (i, 0, 0)),   # query tile
                pl.BlockSpec((Bt, Sk, Hin), lambda i: (i, 0, 0)),   # key tile
                pl.BlockSpec((Bt, Sk, Hin), lambda i: (i, 0, 0)),   # value tile
                pl.BlockSpec((Hin, NHDp), wmap),                    # Wq (pre-scaled)
                pl.BlockSpec((1, NHDp), wmap),                      # bq (pre-scaled)
                pl.BlockSpec((Hin, NHDp), wmap),                    # Wk
                pl.BlockSpec((1, NHDp), wmap),                      # bk
                pl.BlockSpec((Hin, NHDp), wmap),                    # Wv
                pl.BlockSpec((1, NHDp), wmap),                      # bv
                pl.BlockSpec((NHD, Noutp), wmap),                   # Wo
                pl.BlockSpec((1, Noutp), wmap),                     # bo
            ],
            out_specs=pl.BlockSpec((Bt, Sq, Noutp), lambda i: (i, 0, 0)),
            scratch_shapes=[
                pltpu.VMEM((Bt, Sq, NHDp), compute_dtype),          # Q projection
                pltpu.VMEM((Bt, Sk, NHDp), compute_dtype),          # K projection
                pltpu.VMEM((Bt, Sk, NHDp), compute_dtype),          # V projection
                pltpu.VMEM((Bt * Sq, Noutp), jnp.float32),          # output accumulator
            ],
        ),
        compiler_params=pltpu.CompilerParams(
            dimension_semantics=("parallel",),        # batch-tile axis shards across TCs
            vmem_limit_bytes=_vmem_limit_bytes(),     # ~75% of physical VMEM per chip gen
        ),
    )(query, key, value, wq, bq, wk, bk, wv, bv, wo, bo)

    return out[..., :Nout]


# --------------------------- Parameter init ---------------------------

def init_mha_params(key, hidden_size, num_heads, attention_hidden, output_dim):
    """LazyLinear-style init; weights stored as (in, out)."""
    d_inner = num_heads * attention_hidden
    ks = jax.random.split(key, 8)

    def lin(kw, kb, fan_in, fan_out):
        bound = 1.0 / (fan_in ** 0.5)
        w = jax.random.uniform(kw, (fan_in, fan_out), jnp.float32, -bound, bound)
        b = jax.random.uniform(kb, (fan_out,), jnp.float32, -bound, bound)
        return w, b

    Wq, bq = lin(ks[0], ks[1], hidden_size, d_inner)
    Wk, bk = lin(ks[2], ks[3], hidden_size, d_inner)
    Wv, bv = lin(ks[4], ks[5], hidden_size, d_inner)
    Wo, bo = lin(ks[6], ks[7], d_inner, output_dim)
    return dict(Wq=Wq, bq=bq, Wk=Wk, bk=bk, Wv=Wv, bv=bv, Wo=Wo, bo=bo)


# ------------------------------ Reference (pure JAX) ------------------------------

def mha_reference(params, query, key, value, num_heads, attention_hidden):
    B, Sq, _ = query.shape
    _, Sk, _ = key.shape
    D, NH = attention_hidden, num_heads
    Q = query @ params["Wq"] + params["bq"]
    K = key @ params["Wk"] + params["bk"]
    V = value @ params["Wv"] + params["bv"]
    Q = Q.reshape(B, Sq, NH, D).transpose(0, 2, 1, 3)
    K = K.reshape(B, Sk, NH, D).transpose(0, 2, 1, 3)
    V = V.reshape(B, Sk, NH, D).transpose(0, 2, 1, 3)
    s = jnp.einsum("bhqd,bhkd->bhqk", Q, K) / (D ** 0.5)
    p = jax.nn.softmax(s, axis=-1)
    o = jnp.einsum("bhqk,bhkd->bhqd", p, V)
    o = o.transpose(0, 2, 1, 3).reshape(B, Sq, NH * D)
    return o @ params["Wo"] + params["bo"]


# ----------------------------------- Main -----------------------------------

if __name__ == "__main__":
    batch = 2
    Qseq_len = 8
    Kseq_len = 8
    hidden_size = 32
    num_heads = 4
    attention_hidden = 16
    output_dim = 32

    root = jax.random.PRNGKey(0)
    kq, kk, kv, kp = jax.random.split(root, 4)

    query = jax.random.normal(kq, (batch, Qseq_len, hidden_size), jnp.float32)
    key = jax.random.normal(kk, (batch, Kseq_len, hidden_size), jnp.float32)
    value = jax.random.normal(kv, (batch, Kseq_len, hidden_size), jnp.float32)

    params = init_mha_params(kp, hidden_size, num_heads, attention_hidden, output_dim)

    ref = mha_reference(params, query, key, value, num_heads, attention_hidden)

    # f32-operand path (tolerance loosened only for the EUP approximate reciprocal).
    out_f32 = multi_head_attention(params, query, key, value, num_heads, attention_hidden,
                                   compute_dtype=jnp.float32)
    out_f32 = jax.block_until_ready(out_f32)
    assert out_f32.shape == (batch, Qseq_len, output_dim)
    assert jnp.allclose(out_f32, ref, atol=2e-3, rtol=2e-3)

    # bf16 MXU-operand path (f32 accumulation + f32 softmax) — recommended on v6e / v7x.
    out_bf16 = multi_head_attention(params, query, key, value, num_heads, attention_hidden,
                                    compute_dtype=jnp.bfloat16)
    out_bf16 = jax.block_until_ready(out_bf16)
    assert jnp.allclose(out_bf16, ref, atol=5e-2, rtol=5e-2)

    print("KERNEL_OK")
</pallas_src>

<mosaic_0001>
module attributes {stable_mosaic.version = 11 : i64} {
  func.func @_fused_mha_kernel(%arg0: i32, %arg1: memref<2x8x32xf32, #tpu.memory_space<vmem>>, %arg2: memref<2x8x32xf32, #tpu.memory_space<vmem>>, %arg3: memref<2x8x32xf32, #tpu.memory_space<vmem>>, %arg4: memref<32x128xf32, #tpu.memory_space<vmem>>, %arg5: memref<1x128xf32, #tpu.memory_space<vmem>>, %arg6: memref<32x128xf32, #tpu.memory_space<vmem>>, %arg7: memref<1x128xf32, #tpu.memory_space<vmem>>, %arg8: memref<32x128xf32, #tpu.memory_space<vmem>>, %arg9: memref<1x128xf32, #tpu.memory_space<vmem>>, %arg10: memref<64x128xf32, #tpu.memory_space<vmem>>, %arg11: memref<1x128xf32, #tpu.memory_space<vmem>>, %arg12: memref<2x8x128xf32, #tpu.memory_space<vmem>>, %arg13: memref<2x8x128xf32, #tpu.memory_space<vmem>>, %arg14: memref<2x8x128xf32, #tpu.memory_space<vmem>>, %arg15: memref<2x8x128xf32, #tpu.memory_space<vmem>>, %arg16: memref<16x128xf32, #tpu.memory_space<vmem>>) attributes {dimension_semantics = [#tpu.dimension_semantics<parallel>], iteration_bounds = array<i64: 1>, scalar_prefetch = 0 : i64, scratch_operands = 4 : i64, tpu.core_type = #tpu.core_type<tc>, window_params = [{transform_indices = @transform_0, window_bounds = array<i64: 2, 8, 32>}, {transform_indices = @transform_1, window_bounds = array<i64: 2, 8, 32>}, {transform_indices = @transform_2, window_bounds = array<i64: 2, 8, 32>}, {pipeline_mode = #tpu.pipeline_mode<synchronous>, transform_indices = @transform_3, window_bounds = array<i64: 32, 128>}, {pipeline_mode = #tpu.pipeline_mode<synchronous>, transform_indices = @transform_4, window_bounds = array<i64: 1, 128>}, {pipeline_mode = #tpu.pipeline_mode<synchronous>, transform_indices = @transform_5, window_bounds = array<i64: 32, 128>}, {pipeline_mode = #tpu.pipeline_mode<synchronous>, transform_indices = @transform_6, window_bounds = array<i64: 1, 128>}, {pipeline_mode = #tpu.pipeline_mode<synchronous>, transform_indices = @transform_7, window_bounds = array<i64: 32, 128>}, {pipeline_mode = #tpu.pipeline_mode<synchronous>, transform_indices = @transform_8, window_bounds = array<i64: 1, 128>}, {pipeline_mode = #tpu.pipeline_mode<synchronous>, transform_indices = @transform_9, window_bounds = array<i64: 64, 128>}, {pipeline_mode = #tpu.pipeline_mode<synchronous>, transform_indices = @transform_10, window_bounds = array<i64: 1, 128>}, {transform_indices = @transform_11, window_bounds = array<i64: 2, 8, 128>}]} {
    %c0 = arith.constant 0 : index
    %c0_0 = arith.constant 0 : index
    %c0_1 = arith.constant 0 : index
    %0 = vector.load %arg1[%c0, %c0_0, %c0_1] : memref<2x8x32xf32, #tpu.memory_space<vmem>>, vector<2x8x32xf32>
    %1 = vector.shape_cast %0 : vector<2x8x32xf32> to vector<16x32xf32>
    %c0_2 = arith.constant 0 : index
    %c0_3 = arith.constant 0 : index
    %c0_4 = arith.constant 0 : index
    %2 = vector.load %arg2[%c0_2, %c0_3, %c0_4] : memref<2x8x32xf32, #tpu.memory_space<vmem>>, vector<2x8x32xf32>
    %3 = vector.shape_cast %2 : vector<2x8x32xf32> to vector<16x32xf32>
    %c0_5 = arith.constant 0 : index
    %c0_6 = arith.constant 0 : index
    %c0_7 = arith.constant 0 : index
    %4 = vector.load %arg3[%c0_5, %c0_6, %c0_7] : memref<2x8x32xf32, #tpu.memory_space<vmem>>, vector<2x8x32xf32>
    %5 = vector.shape_cast %4 : vector<2x8x32xf32> to vector<16x32xf32>
    %c0_8 = arith.constant 0 : index
    %c0_9 = arith.constant 0 : index
    %6 = vector.load %arg4[%c0_8, %c0_9] : memref<32x128xf32, #tpu.memory_space<vmem>>, vector<32x128xf32>
    %cst = arith.constant dense<0.000000e+00> : vector<16x128xf32>
    %7 = tpu.matmul %1, %6, %cst {dimension_numbers = #tpu.dot_dimension_numbers<[1], [0], [0], [1], [0, 0, 1, 1], [], []>} : vector<16x32xf32>, vector<32x128xf32>, vector<16x128xf32> -> vector<16x128xf32>
    %c0_10 = arith.constant 0 : index
    %c0_11 = arith.constant 0 : index
    %8 = vector.load %arg5[%c0_10, %c0_11] : memref<1x128xf32, #tpu.memory_space<vmem>>, vector<1x128xf32>
    %9 = vector.broadcast %8 : vector<1x128xf32> to vector<16x128xf32>
    %10 = arith.addf %7, %9 : vector<16x128xf32>
    %11 = vector.shape_cast %10 : vector<16x128xf32> to vector<2x8x128xf32>
    %c0_12 = arith.constant 0 : index
    %c0_13 = arith.constant 0 : index
    %c0_14 = arith.constant 0 : index
    %12 = vector.load %arg13[%c0_12, %c0_13, %c0_14] : memref<2x8x128xf32, #tpu.memory_space<vmem>>, vector<2x8x128xf32>
    tpu.vector_store %arg13[%c0_12, %c0_13, %c0_14], %11 {strides = array<i32>} : memref<2x8x128xf32, #tpu.memory_space<vmem>>, vector<2x8x128xf32>,
    %c0_15 = arith.constant 0 : index
    %c0_16 = arith.constant 0 : index
    %13 = vector.load %arg6[%c0_15, %c0_16] : memref<32x128xf32, #tpu.memory_space<vmem>>, vector<32x128xf32>
    %cst_17 = arith.constant dense<0.000000e+00> : vector<16x128xf32>
    %14 = tpu.matmul %3, %13, %cst_17 {dimension_numbers = #tpu.dot_dimension_numbers<[1], [0], [0], [1], [0, 0, 1, 1], [], []>} : vector<16x32xf32>, vector<32x128xf32>, vector<16x128xf32> -> vector<16x128xf32>
    %c0_18 = arith.constant 0 : index
    %c0_19 = arith.constant 0 : index
    %15 = vector.load %arg7[%c0_18, %c0_19] : memref<1x128xf32, #tpu.memory_space<vmem>>, vector<1x128xf32>
    %16 = vector.broadcast %15 : vector<1x128xf32> to vector<16x128xf32>
    %17 = arith.addf %14, %16 : vector<16x128xf32>
    %18 = vector.shape_cast %17 : vector<16x128xf32> to vector<2x8x128xf32>
    %c0_20 = arith.constant 0 : index
    %c0_21 = arith.constant 0 : index
    %c0_22 = arith.constant 0 : index
    %19 = vector.load %arg14[%c0_20, %c0_21, %c0_22] : memref<2x8x128xf32, #tpu.memory_space<vmem>>, vector<2x8x128xf32>
    tpu.vector_store %arg14[%c0_20, %c0_21, %c0_22], %18 {strides = array<i32>} : memref<2x8x128xf32, #tpu.memory_space<vmem>>, vector<2x8x128xf32>,
    %c0_23 = arith.constant 0 : index
    %c0_24 = arith.constant 0 : index
    %20 = vector.load %arg8[%c0_23, %c0_24] : memref<32x128xf32, #tpu.memory_space<vmem>>, vector<32x128xf32>
    %cst_25 = arith.constant dense<0.000000e+00> : vector<16x128xf32>
    %21 = tpu.matmul %5, %20, %cst_25 {dimension_numbers = #tpu.dot_dimension_numbers<[1], [0], [0], [1], [0, 0, 1, 1], [], []>} : vector<16x32xf32>, vector<32x128xf32>, vector<16x128xf32> -> vector<16x128xf32>
    %c0_26 = arith.constant 0 : index
    %c0_27 = arith.constant 0 : index
    %22 = vector.load %arg9[%c0_26, %c0_27] : memref<1x128xf32, #tpu.memory_space<vmem>>, vector<1x128xf32>
    %23 = vector.broadcast %22 : vector<1x128xf32> to vector<16x128xf32>
    %24 = arith.addf %21, %23 : vector<16x128xf32>
    %25 = vector.shape_cast %24 : vector<16x128xf32> to vector<2x8x128xf32>
    %c0_28 = arith.constant 0 : index
    %c0_29 = arith.constant 0 : index
    %c0_30 = arith.constant 0 : index
    %26 = vector.load %arg15[%c0_28, %c0_29, %c0_30] : memref<2x8x128xf32, #tpu.memory_space<vmem>>, vector<2x8x128xf32>
    tpu.vector_store %arg15[%c0_28, %c0_29, %c0_30], %25 {strides = array<i32>} : memref<2x8x128xf32, #tpu.memory_space<vmem>>, vector<2x8x128xf32>,
    %cst_31 = arith.constant 0.000000e+00 : f32
    %27 = vector.broadcast %cst_31 : f32 to vector<16x128xf32>
    %c0_32 = arith.constant 0 : index
    %c0_33 = arith.constant 0 : index
    %28 = vector.load %arg16[%c0_32, %c0_33] : memref<16x128xf32, #tpu.memory_space<vmem>>, vector<16x128xf32>
    tpu.vector_store %arg16[%c0_32, %c0_33], %27 {strides = array<i32>} : memref<16x128xf32, #tpu.memory_space<vmem>>, vector<16x128xf32>,
    %c0_34 = arith.constant 0 : index
    %c0_35 = arith.constant 0 : index
    %c0_36 = arith.constant 0 : index
    %29 = vector.load %arg13[%c0_34, %c0_35, %c0_36] : memref<2x8x128xf32, #tpu.memory_space<vmem>>, vector<2x8x16xf32>
    %c0_37 = arith.constant 0 : index
    %c0_38 = arith.constant 0 : index
    %c0_39 = arith.constant 0 : index
    %30 = vector.load %arg14[%c0_37, %c0_38, %c0_39] : memref<2x8x128xf32, #tpu.memory_space<vmem>>, vector<2x8x16xf32>
    %c0_40 = arith.constant 0 : index
    %c0_41 = arith.constant 0 : index
    %c0_42 = arith.constant 0 : index
    %31 = vector.load %arg15[%c0_40, %c0_41, %c0_42] : memref<2x8x128xf32, #tpu.memory_space<vmem>>, vector<2x8x16xf32>
    "tpu.trace_start"() <{level = 10 : i32, message = "bqd,bkd->bqk"}> : () -> ()
    %cst_43 = arith.constant dense<0.000000e+00> : vector<2x8x8xf32>
    %32 = tpu.matmul %29, %30, %cst_43 {dimension_numbers = #tpu.dot_dimension_numbers<[2], [2], [1], [1], [0, 0, 0, 1, 1, 1], [0], [0]>} : vector<2x8x16xf32>, vector<2x8x16xf32>, vector<2x8x8xf32> -> vector<2x8x8xf32>
    "tpu.trace_stop"() : () -> ()
    %cst_44 = arith.constant dense<0xFF800000> : vector<2x8xf32>
    %33 = vector.multi_reduction <maximumf>, %32, %cst_44 [2] : vector<2x8x8xf32> to vector<2x8xf32>
    %34 = vector.shape_cast %33 : vector<2x8xf32> to vector<2x8x1xf32>
    %35 = vector.broadcast %34 : vector<2x8x1xf32> to vector<2x8x8xf32>
    %36 = arith.subf %32, %35 : vector<2x8x8xf32>
    %37 = math.exp %36 : vector<2x8x8xf32>
    %cst_45 = arith.constant dense<0.000000e+00> : vector<2x8xf32>
    %38 = vector.multi_reduction <add>, %37, %cst_45 [2] : vector<2x8x8xf32> to vector<2x8xf32>
    %39 = vector.shape_cast %38 : vector<2x8xf32> to vector<2x8x1xf32>
    %40 = tpu.reciprocal %39 {approx = true} : vector<2x8x1xf32> -> vector<2x8x1xf32>
    %41 = vector.broadcast %40 : vector<2x8x1xf32> to vector<2x8x8xf32>
    %42 = arith.mulf %37, %41 : vector<2x8x8xf32>
    "tpu.trace_start"() <{level = 10 : i32, message = "bqk,bkd->bqd"}> : () -> ()
    %cst_46 = arith.constant dense<0.000000e+00> : vector<2x8x16xf32>
    %43 = tpu.matmul %42, %31, %cst_46 {dimension_numbers = #tpu.dot_dimension_numbers<[2], [1], [1], [2], [0, 0, 0, 1, 1, 2], [0], [0]>} : vector<2x8x8xf32>, vector<2x8x16xf32>, vector<2x8x16xf32> -> vector<2x8x16xf32>
    "tpu.trace_stop"() : () -> ()
    %c0_47 = arith.constant 0 : index
    %c0_48 = arith.constant 0 : index
    %44 = vector.load %arg10[%c0_47, %c0_48] : memref<64x128xf32, #tpu.memory_space<vmem>>, vector<16x128xf32>
    %c0_49 = arith.constant 0 : index
    %c0_50 = arith.constant 0 : index
    %45 = vector.load %arg16[%c0_49, %c0_50] : memref<16x128xf32, #tpu.memory_space<vmem>>, vector<16x128xf32>
    %46 = vector.shape_cast %43 : vector<2x8x16xf32> to vector<16x16xf32>
    %cst_51 = arith.constant dense<0.000000e+00> : vector<16x128xf32>
    %47 = tpu.matmul %46, %44, %cst_51 {dimension_numbers = #tpu.dot_dimension_numbers<[1], [0], [0], [1], [0, 0, 1, 1], [], []>} : vector<16x16xf32>, vector<16x128xf32>, vector<16x128xf32> -> vector<16x128xf32>
    %48 = arith.addf %45, %47 : vector<16x128xf32>
    %c0_52 = arith.constant 0 : index
    %c0_53 = arith.constant 0 : index
    %49 = vector.load %arg16[%c0_52, %c0_53] : memref<16x128xf32, #tpu.memory_space<vmem>>, vector<16x128xf32>
    tpu.vector_store %arg16[%c0_52, %c0_53], %48 {strides = array<i32>} : memref<16x128xf32, #tpu.memory_space<vmem>>, vector<16x128xf32>,
    %c0_54 = arith.constant 0 : index
    %c0_55 = arith.constant 0 : index
    %c16 = arith.constant 16 : index
    %50 = vector.load %arg13[%c0_54, %c0_55, %c16] : memref<2x8x128xf32, #tpu.memory_space<vmem>>, vector<2x8x16xf32>
    %c0_56 = arith.constant 0 : index
    %c0_57 = arith.constant 0 : index
    %c16_58 = arith.constant 16 : index
    %51 = vector.load %arg14[%c0_56, %c0_57, %c16_58] : memref<2x8x128xf32, #tpu.memory_space<vmem>>, vector<2x8x16xf32>
    %c0_59 = arith.constant 0 : index
    %c0_60 = arith.constant 0 : index
    %c16_61 = arith.constant 16 : index
    %52 = vector.load %arg15[%c0_59, %c0_60, %c16_61] : memref<2x8x128xf32, #tpu.memory_space<vmem>>, vector<2x8x16xf32>
    "tpu.trace_start"() <{level = 10 : i32, message = "bqd,bkd->bqk"}> : () -> ()
    %cst_62 = arith.constant dense<0.000000e+00> : vector<2x8x8xf32>
    %53 = tpu.matmul %50, %51, %cst_62 {dimension_numbers = #tpu.dot_dimension_numbers<[2], [2], [1], [1], [0, 0, 0, 1, 1, 1], [0], [0]>} : vector<2x8x16xf32>, vector<2x8x16xf32>, vector<2x8x8xf32> -> vector<2x8x8xf32>
    "tpu.trace_stop"() : () -> ()
    %cst_63 = arith.constant dense<0xFF800000> : vector<2x8xf32>
    %54 = vector.multi_reduction <maximumf>, %53, %cst_63 [2] : vector<2x8x8xf32> to vector<2x8xf32>
    %55 = vector.shape_cast %54 : vector<2x8xf32> to vector<2x8x1xf32>
    %56 = vector.broadcast %55 : vector<2x8x1xf32> to vector<2x8x8xf32>
    %57 = arith.subf %53, %56 : vector<2x8x8xf32>
    %58 = math.exp %57 : vector<2x8x8xf32>
    %cst_64 = arith.constant dense<0.000000e+00> : vector<2x8xf32>
    %59 = vector.multi_reduction <add>, %58, %cst_64 [2] : vector<2x8x8xf32> to vector<2x8xf32>
    %60 = vector.shape_cast %59 : vector<2x8xf32> to vector<2x8x1xf32>
    %61 = tpu.reciprocal %60 {approx = true} : vector<2x8x1xf32> -> vector<2x8x1xf32>
    %62 = vector.broadcast %61 : vector<2x8x1xf32> to vector<2x8x8xf32>
    %63 = arith.mulf %58, %62 : vector<2x8x8xf32>
    "tpu.trace_start"() <{level = 10 : i32, message = "bqk,bkd->bqd"}> : () -> ()
    %cst_65 = arith.constant dense<0.000000e+00> : vector<2x8x16xf32>
    %64 = tpu.matmul %63, %52, %cst_65 {dimension_numbers = #tpu.dot_dimension_numbers<[2], [1], [1], [2], [0, 0, 0, 1, 1, 2], [0], [0]>} : vector<2x8x8xf32>, vector<2x8x16xf32>, vector<2x8x16xf32> -> vector<2x8x16xf32>
    "tpu.trace_stop"() : () -> ()
    %c16_66 = arith.constant 16 : index
    %c0_67 = arith.constant 0 : index
    %65 = vector.load %arg10[%c16_66, %c0_67] : memref<64x128xf32, #tpu.memory_space<vmem>>, vector<16x128xf32>
    %c0_68 = arith.constant 0 : index
    %c0_69 = arith.constant 0 : index
    %66 = vector.load %arg16[%c0_68, %c0_69] : memref<16x128xf32, #tpu.memory_space<vmem>>, vector<16x128xf32>
    %67 = vector.shape_cast %64 : vector<2x8x16xf32> to vector<16x16xf32>
    %cst_70 = arith.constant dense<0.000000e+00> : vector<16x128xf32>
    %68 = tpu.matmul %67, %65, %cst_70 {dimension_numbers = #tpu.dot_dimension_numbers<[1], [0], [0], [1], [0, 0, 1, 1], [], []>} : vector<16x16xf32>, vector<16x128xf32>, vector<16x128xf32> -> vector<16x128xf32>
    %69 = arith.addf %66, %68 : vector<16x128xf32>
    %c0_71 = arith.constant 0 : index
    %c0_72 = arith.constant 0 : index
    %70 = vector.load %arg16[%c0_71, %c0_72] : memref<16x128xf32, #tpu.memory_space<vmem>>, vector<16x128xf32>
    tpu.vector_store %arg16[%c0_71, %c0_72], %69 {strides = array<i32>} : memref<16x128xf32, #tpu.memory_space<vmem>>, vector<16x128xf32>,
    %c0_73 = arith.constant 0 : index
    %c0_74 = arith.constant 0 : index
    %c32 = arith.constant 32 : index
    %71 = vector.load %arg13[%c0_73, %c0_74, %c32] : memref<2x8x128xf32, #tpu.memory_space<vmem>>, vector<2x8x16xf32>
    %c0_75 = arith.constant 0 : index
    %c0_76 = arith.constant 0 : index
    %c32_77 = arith.constant 32 : index
    %72 = vector.load %arg14[%c0_75, %c0_76, %c32_77] : memref<2x8x128xf32, #tpu.memory_space<vmem>>, vector<2x8x16xf32>
    %c0_78 = arith.constant 0 : index
    %c0_79 = arith.constant 0 : index
    %c32_80 = arith.constant 32 : index
    %73 = vector.load %arg15[%c0_78, %c0_79, %c32_80] : memref<2x8x128xf32, #tpu.memory_space<vmem>>, vector<2x8x16xf32>
    "tpu.trace_start"() <{level = 10 : i32, message = "bqd,bkd->bqk"}> : () -> ()
    %cst_81 = arith.constant dense<0.000000e+00> : vector<2x8x8xf32>
    %74 = tpu.matmul %71, %72, %cst_81 {dimension_numbers = #tpu.dot_dimension_numbers<[2], [2], [1], [1], [0, 0, 0, 1, 1, 1], [0], [0]>} : vector<2x8x16xf32>, vector<2x8x16xf32>, vector<2x8x8xf32> -> vector<2x8x8xf32>
    "tpu.trace_stop"() : () -> ()
    %cst_82 = arith.constant dense<0xFF800000> : vector<2x8xf32>
    %75 = vector.multi_reduction <maximumf>, %74, %cst_82 [2] : vector<2x8x8xf32> to vector<2x8xf32>
    %76 = vector.shape_cast %75 : vector<2x8xf32> to vector<2x8x1xf32>
    %77 = vector.broadcast %76 : vector<2x8x1xf32> to vector<2x8x8xf32>
    %78 = arith.subf %74, %77 : vector<2x8x8xf32>
    %79 = math.exp %78 : vector<2x8x8xf32>
    %cst_83 = arith.constant dense<0.000000e+00> : vector<2x8xf32>
    %80 = vector.multi_reduction <add>, %79, %cst_83 [2] : vector<2x8x8xf32> to vector<2x8xf32>
    %81 = vector.shape_cast %80 : vector<2x8xf32> to vector<2x8x1xf32>
    %82 = tpu.reciprocal %81 {approx = true} : vector<2x8x1xf32> -> vector<2x8x1xf32>
    %83 = vector.broadcast %82 : vector<2x8x1xf32> to vector<2x8x8xf32>
    %84 = arith.mulf %79, %83 : vector<2x8x8xf32>
    "tpu.trace_start"() <{level = 10 : i32, message = "bqk,bkd->bqd"}> : () -> ()
    %cst_84 = arith.constant dense<0.000000e+00> : vector<2x8x16xf32>
    %85 = tpu.matmul %84, %73, %cst_84 {dimension_numbers = #tpu.dot_dimension_numbers<[2], [1], [1], [2], [0, 0, 0, 1, 1, 2], [0], [0]>} : vector<2x8x8xf32>, vector<2x8x16xf32>, vector<2x8x16xf32> -> vector<2x8x16xf32>
    "tpu.trace_stop"() : () -> ()
    %c32_85 = arith.constant 32 : index
    %c0_86 = arith.constant 0 : index
    %86 = vector.load %arg10[%c32_85, %c0_86] : memref<64x128xf32, #tpu.memory_space<vmem>>, vector<16x128xf32>
    %c0_87 = arith.constant 0 : index
    %c0_88 = arith.constant 0 : index
    %87 = vector.load %arg16[%c0_87, %c0_88] : memref<16x128xf32, #tpu.memory_space<vmem>>, vector<16x128xf32>
    %88 = vector.shape_cast %85 : vector<2x8x16xf32> to vector<16x16xf32>
    %cst_89 = arith.constant dense<0.000000e+00> : vector<16x128xf32>
    %89 = tpu.matmul %88, %86, %cst_89 {dimension_numbers = #tpu.dot_dimension_numbers<[1], [0], [0], [1], [0, 0, 1, 1], [], []>} : vector<16x16xf32>, vector<16x128xf32>, vector<16x128xf32> -> vector<16x128xf32>
    %90 = arith.addf %87, %89 : vector<16x128xf32>
    %c0_90 = arith.constant 0 : index
    %c0_91 = arith.constant 0 : index
    %91 = vector.load %arg16[%c0_90, %c0_91] : memref<16x128xf32, #tpu.memory_space<vmem>>, vector<16x128xf32>
    tpu.vector_store %arg16[%c0_90, %c0_91], %90 {strides = array<i32>} : memref<16x128xf32, #tpu.memory_space<vmem>>, vector<16x128xf32>,
    %c0_92 = arith.constant 0 : index
    %c0_93 = arith.constant 0 : index
    %c48 = arith.constant 48 : index
    %92 = vector.load %arg13[%c0_92, %c0_93, %c48] : memref<2x8x128xf32, #tpu.memory_space<vmem>>, vector<2x8x16xf32>
    %c0_94 = arith.constant 0 : index
    %c0_95 = arith.constant 0 : index
    %c48_96 = arith.constant 48 : index
    %93 = vector.load %arg14[%c0_94, %c0_95, %c48_96] : memref<2x8x128xf32, #tpu.memory_space<vmem>>, vector<2x8x16xf32>
    %c0_97 = arith.constant 0 : index
    %c0_98 = arith.constant 0 : index
    %c48_99 = arith.constant 48 : index
    %94 = vector.load %arg15[%c0_97, %c0_98, %c48_99] : memref<2x8x128xf32, #tpu.memory_space<vmem>>, vector<2x8x16xf32>
    "tpu.trace_start"() <{level = 10 : i32, message = "bqd,bkd->bqk"}> : () -> ()
    %cst_100 = arith.constant dense<0.000000e+00> : vector<2x8x8xf32>
    %95 = tpu.matmul %92, %93, %cst_100 {dimension_numbers = #tpu.dot_dimension_numbers<[2], [2], [1], [1], [0, 0, 0, 1, 1, 1], [0], [0]>} : vector<2x8x16xf32>, vector<2x8x16xf32>, vector<2x8x8xf32> -> vector<2x8x8xf32>
    "tpu.trace_stop"() : () -> ()
    %cst_101 = arith.constant dense<0xFF800000> : vector<2x8xf32>
    %96 = vector.multi_reduction <maximumf>, %95, %cst_101 [2] : vector<2x8x8xf32> to vector<2x8xf32>
    %97 = vector.shape_cast %96 : vector<2x8xf32> to vector<2x8x1xf32>
    %98 = vector.broadcast %97 : vector<2x8x1xf32> to vector<2x8x8xf32>
    %99 = arith.subf %95, %98 : vector<2x8x8xf32>
    %100 = math.exp %99 : vector<2x8x8xf32>
    %cst_102 = arith.constant dense<0.000000e+00> : vector<2x8xf32>
    %101 = vector.multi_reduction <add>, %100, %cst_102 [2] : vector<2x8x8xf32> to vector<2x8xf32>
    %102 = vector.shape_cast %101 : vector<2x8xf32> to vector<2x8x1xf32>
    %103 = tpu.reciprocal %102 {approx = true} : vector<2x8x1xf32> -> vector<2x8x1xf32>
    %104 = vector.broadcast %103 : vector<2x8x1xf32> to vector<2x8x8xf32>
    %105 = arith.mulf %100, %104 : vector<2x8x8xf32>
    "tpu.trace_start"() <{level = 10 : i32, message = "bqk,bkd->bqd"}> : () -> ()
    %cst_103 = arith.constant dense<0.000000e+00> : vector<2x8x16xf32>
    %106 = tpu.matmul %105, %94, %cst_103 {dimension_numbers = #tpu.dot_dimension_numbers<[2], [1], [1], [2], [0, 0, 0, 1, 1, 2], [0], [0]>} : vector<2x8x8xf32>, vector<2x8x16xf32>, vector<2x8x16xf32> -> vector<2x8x16xf32>
    "tpu.trace_stop"() : () -> ()
    %c48_104 = arith.constant 48 : index
    %c0_105 = arith.constant 0 : index
    %107 = vector.load %arg10[%c48_104, %c0_105] : memref<64x128xf32, #tpu.memory_space<vmem>>, vector<16x128xf32>
    %c0_106 = arith.constant 0 : index
    %c0_107 = arith.constant 0 : index
    %108 = vector.load %arg16[%c0_106, %c0_107] : memref<16x128xf32, #tpu.memory_space<vmem>>, vector<16x128xf32>
    %109 = vector.shape_cast %106 : vector<2x8x16xf32> to vector<16x16xf32>
    %cst_108 = arith.constant dense<0.000000e+00> : vector<16x128xf32>
    %110 = tpu.matmul %109, %107, %cst_108 {dimension_numbers = #tpu.dot_dimension_numbers<[1], [0], [0], [1], [0, 0, 1, 1], [], []>} : vector<16x16xf32>, vector<16x128xf32>, vector<16x128xf32> -> vector<16x128xf32>
    %111 = arith.addf %108, %110 : vector<16x128xf32>
    %c0_109 = arith.constant 0 : index
    %c0_110 = arith.constant 0 : index
    %112 = vector.load %arg16[%c0_109, %c0_110] : memref<16x128xf32, #tpu.memory_space<vmem>>, vector<16x128xf32>
    tpu.vector_store %arg16[%c0_109, %c0_110], %111 {strides = array<i32>} : memref<16x128xf32, #tpu.memory_space<vmem>>, vector<16x128xf32>,
    %c0_111 = arith.constant 0 : index
    %c0_112 = arith.constant 0 : index
    %113 = vector.load %arg16[%c0_111, %c0_112] : memref<16x128xf32, #tpu.memory_space<vmem>>, vector<16x128xf32>
    %c0_113 = arith.constant 0 : index
    %c0_114 = arith.constant 0 : index
    %114 = vector.load %arg11[%c0_113, %c0_114] : memref<1x128xf32, #tpu.memory_space<vmem>>, vector<1x128xf32>
    %115 = vector.broadcast %114 : vector<1x128xf32> to vector<16x128xf32>
    %116 = arith.addf %113, %115 : vector<16x128xf32>
    %117 = vector.shape_cast %116 : vector<16x128xf32> to vector<2x8x128xf32>
    %c0_115 = arith.constant 0 : index
    %c0_116 = arith.constant 0 : index
    %c0_117 = arith.constant 0 : index
    %118 = vector.load %arg12[%c0_115, %c0_116, %c0_117] : memref<2x8x128xf32, #tpu.memory_space<vmem>>, vector<2x8x128xf32>
    tpu.vector_store %arg12[%c0_115, %c0_116, %c0_117], %117 {strides = array<i32>} : memref<2x8x128xf32, #tpu.memory_space<vmem>>, vector<2x8x128xf32>,
    return
  }
  func.func @transform_0(%arg0: i32) -> (i32, i32, i32) {
    %c0_i32 = arith.constant 0 : i32
    %c0_i32_0 = arith.constant 0 : i32
    %c0_i32_1 = arith.constant 0 : i32
    return %arg0, %c0_i32, %c0_i32_0 : i32, i32, i32
  }
  func.func @transform_1(%arg0: i32) -> (i32, i32, i32) {
    %c0_i32 = arith.constant 0 : i32
    %c0_i32_0 = arith.constant 0 : i32
    %c0_i32_1 = arith.constant 0 : i32
    return %arg0, %c0_i32, %c0_i32_0 : i32, i32, i32
  }
  func.func @transform_2(%arg0: i32) -> (i32, i32, i32) {
    %c0_i32 = arith.constant 0 : i32
    %c0_i32_0 = arith.constant 0 : i32
    %c0_i32_1 = arith.constant 0 : i32
    return %arg0, %c0_i32, %c0_i32_0 : i32, i32, i32
  }
  func.func @transform_3(%arg0: i32) -> (i32, i32) {
    %c0_i32 = arith.constant 0 : i32
    %c0_i32_0 = arith.constant 0 : i32
    %c0_i32_1 = arith.constant 0 : i32
    return %c0_i32, %c0_i32_0 : i32, i32
  }
  func.func @transform_4(%arg0: i32) -> (i32, i32) {
    %c0_i32 = arith.constant 0 : i32
    %c0_i32_0 = arith.constant 0 : i32
    %c0_i32_1 = arith.constant 0 : i32
    return %c0_i32, %c0_i32_0 : i32, i32
  }
  func.func @transform_5(%arg0: i32) -> (i32, i32) {
    %c0_i32 = arith.constant 0 : i32
    %c0_i32_0 = arith.constant 0 : i32
    %c0_i32_1 = arith.constant 0 : i32
    return %c0_i32, %c0_i32_0 : i32, i32
  }
  func.func @transform_6(%arg0: i32) -> (i32, i32) {
    %c0_i32 = arith.constant 0 : i32
    %c0_i32_0 = arith.constant 0 : i32
    %c0_i32_1 = arith.constant 0 : i32
    return %c0_i32, %c0_i32_0 : i32, i32
  }
  func.func @transform_7(%arg0: i32) -> (i32, i32) {
    %c0_i32 = arith.constant 0 : i32
    %c0_i32_0 = arith.constant 0 : i32
    %c0_i32_1 = arith.constant 0 : i32
    return %c0_i32, %c0_i32_0 : i32, i32
  }
  func.func @transform_8(%arg0: i32) -> (i32, i32) {
    %c0_i32 = arith.constant 0 : i32
    %c0_i32_0 = arith.constant 0 : i32
    %c0_i32_1 = arith.constant 0 : i32
    return %c0_i32, %c0_i32_0 : i32, i32
  }
  func.func @transform_9(%arg0: i32) -> (i32, i32) {
    %c0_i32 = arith.constant 0 : i32
    %c0_i32_0 = arith.constant 0 : i32
    %c0_i32_1 = arith.constant 0 : i32
    return %c0_i32, %c0_i32_0 : i32, i32
  }
  func.func @transform_10(%arg0: i32) -> (i32, i32) {
    %c0_i32 = arith.constant 0 : i32
    %c0_i32_0 = arith.constant 0 : i32
    %c0_i32_1 = arith.constant 0 : i32
    return %c0_i32, %c0_i32_0 : i32, i32
  }
  func.func @transform_11(%arg0: i32) -> (i32, i32, i32) {
    %c0_i32 = arith.constant 0 : i32
    %c0_i32_0 = arith.constant 0 : i32
    %c0_i32_1 = arith.constant 0 : i32
    return %arg0, %c0_i32, %c0_i32_0 : i32, i32, i32
  }
}

</mosaic_0001>

<bundles_post_ra>
// kernel: tpu_custom_call.1
= control target key start
LH: loop header
LB: loop body
LE: loop exit
PB: predicated region body
PF: predicated region fallthrough
CT: control target
= control target key end

     0   :  { %16 = vsyncpa [#allocation7], 0  ;;  %s1554_s0 = inlined_call_operand.hbm [shape: f32[2,8,32], index: 0, kind: input, shape index: {}]   ;;  %s1555_s1 = inlined_call_operand.hbm [shape: f32[2,8,32], index: 1, kind: input, shape index: {}]   ;;  %s1556_s2 = inlined_call_operand.hbm [shape: f32[2,8,32], index: 2, kind: input, shape index: {}]   ;;  %s1557_s3 = inlined_call_operand.hbm [shape: f32[32,128], index: 3, kind: input, shape index: {}]   ;;  %s1558_s4 = inlined_call_operand.vmem [shape: f32[1,128], index: 4, kind: input, shape index: {}]   ;;  %s1559_s5 = inlined_call_operand.hbm [shape: f32[32,128], index: 5, kind: input, shape index: {}]   ;;  %s1560_s6 = inlined_call_operand.vmem [shape: f32[1,128], index: 6, kind: input, shape index: {}]   ;;  %s1561_s7 = inlined_call_operand.hbm [shape: f32[32,128], index: 7, kind: input, shape index: {}]   ;;  %s1562_s8 = inlined_call_operand.vmem [shape: f32[1,128], index: 8, kind: input, shape index: {}]   ;;  %s1563_s9 = inlined_call_operand.hbm [shape: f32[64,128], index: 9, kind: input, shape index: {}]   ;;  %s1564_s10 = inlined_call_operand.vmem [shape: f32[1,128], index: 10, kind: input, shape index: {}]   ;;  %s1565_s11 = inlined_call_operand.hbm [shape: f32[2,8,128], index: 11, kind: output, shape index: {}]  }
   0x1   :  { %17 = vsyncpa [#allocation10], 0 }
   0x2   :  { %18 = vsyncpa [#allocation13], 0 }
   0x3   :  { %19 = vsyncpa [#allocation16], 0 }
   0x4   :  { %20 = vsyncpa [#allocation8], 0  ;;  %s38_s19 = sshll.u32 %s1555_s1, 4  ;;  %s1302_s20 = smov [#allocation9]   ;;  %s39_s19 = int_to_ptr.hbm [resolvable:$true] %s38_s19 }
   0x5   :  { %s40_s21 = sshll.u32 %s1302_s20, 4  ;;  %s64_s24 = sshll.u32 %s1557_s3, 4  ;;  %s41_s21 = int_to_ptr.vmem [resolvable:$true] %s40_s21  ;;  %s65_s24 = int_to_ptr.hbm [resolvable:$true] %s64_s24 }
   0x6   :  { %s1303_s25 = smov 128   ;;  %s1304_s26 = smov 8  }
   0x7   :  { %46 = dma.hbm_to_vmem [thread:$0]  %s39_s19, 256, %s41_s21, [#allocation10], %s1303_s25, %s1303_s25, %s1304_s26  }
   0x8   :  { %s1305_s27 = smov [#allocation12]   ;;  %s94_s1 = sshll.u32 %s1561_s7, 4  ;;  %s95_s1 = int_to_ptr.hbm [resolvable:$true] %s94_s1 }
   0x9   :  { %s66_s28 = sshll.u32 %s1305_s27, 4  ;;  %s25_s13 = sshll.u32 %s1554_s0, 4  ;;  %s67_s28 = int_to_ptr.vmem [resolvable:$true] %s66_s28  ;;  %s26_s13 = int_to_ptr.hbm [resolvable:$true] %s25_s13 }
   0xa   :  { %72 = dma.hbm_to_vmem [thread:$0]  %s65_s24, 512, %s67_s28, [#allocation13], %s1303_s25, %s1303_s25, %s1304_s26  }
   0xb   :  { %s1306_s14 = smov [#allocation15]   ;;  %s1307_s16 = smov [#allocation6]  }
   0xc   :  { %s96_s15 = sshll.u32 %s1306_s14, 4  ;;  %s27_s7 = sshll.u32 %s1307_s16, 4  ;;  %s97_s15 = int_to_ptr.vmem [resolvable:$true] %s96_s15  ;;  %s28_s7 = int_to_ptr.vmem [resolvable:$true] %s27_s7 }
   0xd   :  { %102 = dma.hbm_to_vmem [thread:$0]  %s95_s1, 512, %s97_s15, [#allocation16], %s1303_s25, %s1303_s25, %s1304_s26  }
   0xe   :  { %s51_s19 = sshll.u32 %s1556_s2, 4  ;;  %s79_s21 = sshll.u32 %s1559_s5, 4  ;;  %s52_s19 = int_to_ptr.hbm [resolvable:$true] %s51_s19  ;;  %s80_s21 = int_to_ptr.hbm [resolvable:$true] %s79_s21 }
   0xf   :  { %33 = dma.hbm_to_vmem [thread:$0]  %s26_s13, 256, %s28_s7, [#allocation7], %s1303_s25, %s1303_s25, %s1304_s26  }
  0x10   :  { %s1308_s22 = smov [#allocation11]   ;;  %s1309_s24 = smov [#allocation14]  }
  0x11   :  { %s53_s23 = sshll.u32 %s1308_s22, 4  ;;  %s81_s2 = sshll.u32 %s1309_s24, 4  ;;  %s54_s23 = int_to_ptr.vmem [resolvable:$true] %s53_s23  ;;  %s82_s2 = int_to_ptr.vmem [resolvable:$true] %s81_s2 }
  0x12   :  { %59 = dma.hbm_to_vmem [thread:$0]  %s52_s19, 256, %s54_s23, [#allocation10], %s1303_s25, %s1303_s25, %s1304_s26  }
  0x13   :  { %s109_s29 = sshll.u32 %s1563_s9, 4  ;;  %s1310_s5 = smov [#allocation17]   ;;  %s110_s29 = int_to_ptr.hbm [resolvable:$true] %s109_s29 }
  0x14   :  { %87 = dma.hbm_to_vmem [thread:$0]  %s80_s21, 512, %s82_s2, [#allocation13], %s1303_s25, %s1303_s25, %s1304_s26  }
  0x15   :  { %s111_s30 = sshll.u32 %s1310_s5, 4  ;;  %s112_s30 = int_to_ptr.vmem [resolvable:$true] %s111_s30 }
  0x16   :  { %117 = dma.hbm_to_vmem [thread:$0]  %s110_s29, 1024, %s112_s30, [#allocation16], %s1303_s25, %s1303_s25, %s1304_s26  }
  0x17   :  { %1292 = dma.done.wait [#allocation7], 256  }
  0x18   :  { %1293 = vsyncadd [#allocation7], 4294967040 }
  0x19   :  { %1294 = dma.done.wait [#allocation10], 512  }
  0x1a   :  { %1295 = vsyncadd [#allocation10], 4294966784 }
  0x1b   :  { %1296 = dma.done.wait [#allocation13], 1024  }
  0x1c   :  { %1297 = vsyncadd [#allocation13], 4294966272 }
  0x1d   :  { %1298 = dma.done.wait [#allocation16], 1536  }
  0x1e   :  { %1299 = vsyncadd [#allocation16], 4294965760  ;;  %v197_v0 = vld [vmem:[#allocation14 + $0x18] sm:$0xff]  ;;  %v196_v1 = vld [vmem:[#allocation14 + $0x10] sm:$0xff]  ;;  %vm162_vm0 = vcmask 261120   ;;  %vm280_vm1 = vcmask 130048  }
  0x1f   :  { %v157_v2 = vld [vmem:[#allocation12 + $0x18] sm:$0xff]  ;;  %220 = vmatpush.msra.mxu1 %v197_v0  ;;  %v156_v3 = vld [vmem:[#allocation12 + $0x10] sm:$0xff]  ;;  %v195_v4 = vld [vmem:[#allocation14 + $0x8] sm:$0xff]  ;;  %s1311_s13 = smov 112   ;;  %vm333_vm2 = vcmask 64512   ;;  %s1313_s14 = smov 80  }
  0x20   :  { %181 = vmatpush.msra.mxu0 %v157_v2  ;;  %v155_v5 = vld [vmem:[#allocation12 + $0x8] sm:$0xff]  ;;  %v194_v6 = vld [vmem:[#allocation14] sm:$0xff]  ;;  %v148_v9 = vld [vmem:[#allocation6] sm:$0xff]  ;;  %s1314_s7 = smov [#allocation18]   ;;  %s992_s0 = sshll.u32 %s1565_s11, 4  ;;  %s993_s0 = int_to_ptr.hbm [resolvable:$true] %s992_s0 }
  0x21   :  { %221 = vmatpush.msra.mxu1 %v196_v1  ;;  %v150_v7 = vld [vmem:[#allocation9] sm:$0xff]  ;;  %v151_v10 = vld [vmem:[#allocation9 + $0x8] sm:$0xff]  ;;  %v149_v11 = vld [vmem:[#allocation6 + $0x8] sm:$0xff]  ;;  %s990_s17 = sshll.u32 %s1314_s7, 4  ;;  %s991_s17 = int_to_ptr.vmem [resolvable:$true] %s990_s17 }
  0x22   :  { %182 = vmatpush.msra.mxu0 %v156_v3  ;;  %v154_v8 = vld [vmem:[#allocation12] sm:$0xff]  ;;  %v236_v12 = vld [vmem:[#allocation15 + $0x18] sm:$0xff]  ;;  %v235_v13 = vld [vmem:[#allocation15 + $0x10] sm:$0xff] }
  0x23   :  { %222 = vmatpush.msra.mxu1 %v195_v4  ;;  %259 = vmatpush.msra.mxu2 %v236_v12  ;;  %v234_v14 = vld [vmem:[#allocation15 + $0x8] sm:$0xff]  ;;  %v233_v15 = vld [vmem:[#allocation15] sm:$0xff]  ;;  %v152_v16 = vld [vmem:[#allocation11] sm:$0xff] }
  0x24   :  { %183 = vmatpush.msra.mxu0 %v155_v5  ;;  %v1064_v17 = vld [vmem:[%s1560_s6] ss:$0 sm:$0xff]  ;;  %v153_v27 = vld [vmem:[#allocation11 + $0x8] sm:$0xff]  ;;  %v403_v1 = vld [vmem:[#allocation17 + $0x8] sm:$0xff] }
  0x25   :  { %223 = vmatpush.msra.mxu1 %v194_v6  ;;  %260 = vmatpush.msra.mxu2 %v235_v13  ;;  %v1065_v18 = vld [vmem:[%s1558_s4] ss:$0 sm:$0xff]  ;;  %v402_v2 = vld [vmem:[#allocation17] sm:$0xff]  ;;  %v582_v12 = vld [vmem:[#allocation17 + $0x18] sm:$0xff] }
  0x26   :  { %184 = vmatpush.msra.mxu0 %v154_v8  ;;  %1010 = vmatmul.msk.f32.vlgmr.msra.gmra.mxu1 %vm162_vm0, %v150_v7  ;;  %v1066_v29 = vld [vmem:[%s1562_s8] ss:$0 sm:$0xff]  ;;  %s1312_s8 = smov 96  }
  0x27   :  { %1008 = vmatmul.msk.f32.vlgmr.msra.gmra.mxu0 %vm162_vm0, %v148_v9  ;;  %261 = vmatpush.msra.mxu2 %v234_v14  ;;  %v581_v13 = vld [vmem:[#allocation17 + $0x10] sm:$0xff] }
  0x28   :  { %426 = vmatpush.msrb.mxu1 %v403_v1 }
  0x29   :  { %262 = vmatpush.msra.mxu2 %v233_v15 }
  0x2a   :  { %1012 = vmatmul.msk.f32.vlgmr.msra.gmra.mxu2 %vm162_vm0, %v152_v16  ;;  %427 = vmatpush.msrb.mxu1 %v402_v2 }
  0x2e   :  { %1011 = vmatmul.msk.f32.gmra.mxu1 %vm162_vm0, %v151_v10 }
  0x2f   :  { %1009 = vmatmul.msk.f32.gmra.mxu0 %vm162_vm0, %v149_v11 }
  0x32   :  { %1013 = vmatmul.msk.f32.gmra.mxu2 %vm162_vm0, %v153_v27 }
  0xa3   :  { %v225_v19 = vpop.f32.mrf.mxu1 }
  0xa4   :  { %v186_v20 = vpop.f32.mrf.mxu0  ;;  %v1428_v21 = vadd.f32 %v1064_v17, %v225_v19 }
  0xa5   :  { %v1430_v22 = vadd.f32 %v1065_v18, %v186_v20 }
  0xa6   :  { %449 = vrot.lane.b32.xlu0 %v1428_v21, %s1311_s13  ;;  %1014 = vmatpush.xpose.msk.msrb.mxu0 %vm280_vm1, %v1428_v21 }
  0xa9   :  { %1015 = vmatmul.msk.f32.vlgmr.msrb.gmra.mxu0 %vm280_vm1, %v1430_v22 }
  0xab   :  { %v228_v23 = vpop.f32.mrf.mxu1 }
  0xac   :  { %v189_v24 = vpop.f32.mrf.mxu0  ;;  %v1438_v25 = vadd.f32 %v1064_v17, %v228_v23 }
  0xad   :  { %v1440_v26 = vadd.f32 %v1065_v18, %v189_v24  ;;  %v264_v30 = vpop.f32.mrf.mxu2 }
  0xae   :  { %1016 = vmatpush.xpose.msk.msra.mxu3 %vm280_vm1, %v1438_v25  ;;  %446 = vrot.lane.b32.xlu0 %v1430_v22, %s1311_s13  ;;  %v1457_v31 = vadd.f32 %v1066_v29, %v264_v30 }
  0xaf   :  { %479 = vrot.lane.b32.xlu2 %v1438_v25, %s1311_s13 }
  0xb1   :  { %1017 = vmatmul.msk.f32.vlgmr.msra.gmra.mxu3 %vm280_vm1, %v1440_v26 }
  0xb2   :  { %374 = vmatpush.msrb.mxu3 %v1457_v31 }
  0xb5   :  { %v267_v38 = vpop.f32.mrf.mxu2 }
  0xb6   :  { %v1464_v39 = vadd.f32 %v1066_v29, %v267_v38 }
  0xb7   :  { %476 = vrot.lane.b32.xlu2 %v1440_v26, %s1311_s13 }
  0xb8   :  { %397 = vmatpush.msra.mxu0 %v1464_v39 }
 0x109   :  { %v480_v32 = vpop.permute.xlu2 %479 }
 0x10a   :  { %1024 = vmatpush.xpose.msk.msra.mxu3 %vm280_vm1, %v480_v32 }
 0x111   :  { %v477_v53 = vpop.permute.xlu2 %476 }
 0x118   :  { %v450_v28 = vpop.permute.xlu0 %449 }
 0x119   :  { %1022 = vmatpush.xpose.msk.msrb.mxu2 %vm280_vm1, %v450_v28 }
 0x120   :  { %v447_v33 = vpop.permute.xlu0 %446 }
 0x121   :  { %1023 = vmatmul.msk.f32.vlgmr.msrb.gmra.mxu2 %vm280_vm1, %v447_v33 }
 0x126   :  { %v304_v34 = vpop.f32.mrf.mxu0 }
 0x127   :  { %v334_v35 = vsel %vm333_vm2, %v304_v34, -inf }
 0x128   :  { %335 = vmax.xlane.f32.xlu1 %v334_v35 }
 0x134   :  { %v330_v36 = vpop.f32.mrf.mxu3 }
 0x135   :  { %v337_v37 = vsel %vm333_vm2, %v330_v36, -inf }
 0x136   :  { %338 = vmax.xlane.f32.xlu0 %v337_v37 }
 0x19b   :  { %v336_v40 = vpop.xlane.xlu1 %335 }
 0x19c   :  { %v340_v41 = vsub.f32 %v304_v34, %v336_v40 }
 0x19e   :  { %v342_v42 = vmul.f32 1.442695, %v340_v41 }
 0x1a0   :  { %1068 = vpow2.f32 %v342_v42 }
 0x1a4   :  { %v472_v47 = vpop.f32.mrf.mxu2 }
 0x1a5   :  { %v505_v49 = vsel %vm333_vm2, %v472_v47, -inf }
 0x1a6   :  { %v1069_v43 = vpop.eup %1068 }
 0x1a7   :  { %v346_v44 = vsel %vm333_vm2, %v1069_v43, 0.0 }
 0x1a8   :  { %347 = vadd.xlane.f32.xlu1 %v346_v44 }
 0x1a9   :  { %v339_v45 = vpop.xlane.xlu0 %338 }
 0x1aa   :  { %v341_v46 = vsub.f32 %v330_v36, %v339_v45 }
 0x1ac   :  { %v344_v48 = vmul.f32 1.442695, %v341_v46 }
 0x1ae   :  { %1070 = vpow2.f32 %v344_v48  ;;  %v761_v48 = vld [vmem:[#allocation17 + $0x28] sm:$0xff] }
 0x1b0   :  { %506 = vmax.xlane.f32.xlu1 %v505_v49  ;;  %v760_v49 = vld [vmem:[#allocation17 + $0x20] sm:$0xff] }
 0x1b4   :  { %v1071_v50 = vpop.eup %1070 }
 0x1b5   :  { %v349_v51 = vsel %vm333_vm2, %v1071_v50, 0.0 }
 0x1b6   :  { %350 = vadd.xlane.f32.xlu2 %v349_v51 }
 0x1c9   :  { %528 = vrot.lane.b32.xlu1 %v1457_v31, %s1311_s13 }
 0x1ce   :  { %625 = vrot.lane.b32.xlu2 %v1430_v22, %s1312_s8 }
 0x21b   :  { %v348_v52 = vpop.xlane.xlu1 %347 }
 0x21c   :  { %1072 = vrcp.f32 %v348_v52 }
 0x222   :  { %v1073_v54 = vpop.eup %1072 }
 0x223   :  { %v507_v55 = vpop.xlane.xlu1 %506  ;;  %v354_v56 = vmul.f32 %v1073_v54, %v1069_v43 }
 0x224   :  { %v511_v57 = vsub.f32 %v472_v47, %v507_v55 }
 0x225   :  { %1018 = vmatmul.msk.f32.vlgmr.msrb.gmra.mxu3 %vm333_vm2, %v354_v56 }
 0x226   :  { %v513_v58 = vmul.f32 1.442695, %v511_v57  ;;  %605 = vmatpush.msrb.mxu3 %v582_v12  ;;  %v1059_v12 = vpack.i.bf16 %v1464_v39, %v1457_v31 }
 0x228   :  { %1074 = vpow2.f32 %v513_v58  ;;  %606 = vmatpush.msrb.mxu3 %v581_v13  ;;  %v940_v13 = vld [vmem:[#allocation17 + $0x38] sm:$0xff] }
 0x229   :  { %v351_v59 = vpop.xlane.xlu2 %350 }
 0x22a   :  { %1076 = vrcp.f32 %v351_v59 }
 0x22d   :  { %1025 = vmatmul.msk.f32.vlgmr.msra.gmra.mxu3 %vm280_vm1, %v477_v53 }
 0x22e   :  { %v1075_v60 = vpop.eup %1074 }
 0x22f   :  { %v517_v61 = vsel %vm333_vm2, %v1075_v60, 0.0 }
 0x230   :  { %v1077_v62 = vpop.eup %1076  ;;  %518 = vadd.xlane.f32.xlu1 %v517_v61 }
 0x231   :  { %v355_v63 = vmul.f32 %v1077_v62, %v1071_v50  ;;  %v626_v11 = vpop.permute.xlu2 %625 }
 0x233   :  { %1019 = vmatmul.msk.f32.vlgmr.msra.gmra.mxu0 %vm333_vm2, %v355_v63 }
 0x23b   :  { %v529_v0 = vpop.permute.xlu1 %528 }
 0x23c   :  { %549 = vmatpush.msrb.mxu0 %v529_v0 }
 0x249   :  { %628 = vrot.lane.b32.xlu1 %v1428_v21, %s1312_s8 }
 0x2a3   :  { %v519_v3 = vpop.xlane.xlu1 %518 }
 0x2a4   :  { %1078 = vrcp.f32 %v519_v3 }
 0x2a8   :  { %v376_v4 = vpop.f32.mrf.mxu3 }
 0x2a9   :  { %1020 = vmatmul.msk.f32.vlgmr.msrb.gmra.mxu1 %vm280_vm1, %v376_v4 }
 0x2aa   :  { %v1079_v5 = vpop.eup %1078 }
 0x2ab   :  { %v525_v6 = vmul.f32 %v1079_v5, %v1075_v60 }
 0x2ad   :  { %1026 = vmatmul.msk.f32.vlgmr.msrb.gmra.mxu0 %vm333_vm2, %v525_v6 }
 0x2b0   :  { %v399_v7 = vpop.f32.mrf.mxu0  ;;  %v502_v8 = vpop.f32.mrf.mxu3 }
 0x2b1   :  { %1021 = vmatmul.msk.f32.gmra.mxu1 %vm280_vm1, %v399_v7  ;;  %v508_v9 = vsel %vm333_vm2, %v502_v8, -inf }
 0x2b2   :  { %509 = vmax.xlane.f32.xlu0 %v508_v9 }
 0x2bb   :  { %v629_v10 = vpop.permute.xlu1 %628 }
 0x2bc   :  { %1030 = vmatpush.xpose.msk.msra.mxu0 %vm280_vm1, %v629_v10 }
 0x2bf   :  { %1031 = vmatmul.msk.f32.vlgmr.msra.gmra.mxu0 %vm280_vm1, %v626_v11 }
 0x2c6   :  { %555 = vrot.lane.b32.xlu0 %v1464_v39, %s1311_s13 }
 0x2ce   :  { %807 = vrot.lane.b32.xlu0 %v1428_v21, %s1313_s14 }
 0x325   :  { %v510_v14 = vpop.xlane.xlu0 %509 }
 0x326   :  { %v512_v15 = vsub.f32 %v502_v8, %v510_v14  ;;  %v1511_v38 = vpop.f32.mrf.mxu1 }
 0x328   :  { %v515_v16 = vmul.f32 1.442695, %v512_v15 }
 0x32a   :  { %1080 = vpow2.f32 %v515_v16  ;;  %v551_v17 = vpop.f32.mrf.mxu0 }
 0x32b   :  { %1028 = vmatmul.msk.f32.vlgmr.msrb.gmra.mxu3 %vm280_vm1, %v551_v17 }
 0x32e   :  { %v1514_v44 = vpop.f32.mrf.mxu1 }
 0x330   :  { %v1081_v18 = vpop.eup %1080 }
 0x331   :  { %v520_v19 = vsel %vm333_vm2, %v1081_v18, 0.0 }
 0x332   :  { %521 = vadd.xlane.f32.xlu1 %v520_v19 }
 0x338   :  { %v556_v20 = vpop.permute.xlu0 %555 }
 0x339   :  { %576 = vmatpush.msra.mxu2 %v556_v20 }
 0x33c   :  { %v651_v23 = vpop.f32.mrf.mxu0 }
 0x33d   :  { %v684_v21 = vsel %vm333_vm2, %v651_v23, -inf }
 0x33e   :  { %685 = vmax.xlane.f32.xlu2 %v684_v21 }
 0x340   :  { %v808_v36 = vpop.permute.xlu0 %807 }
 0x34b   :  { %707 = vrot.lane.b32.xlu1 %v1457_v31, %s1312_s8 }
 0x353   :  { %655 = vrot.lane.b32.xlu1 %v1440_v26, %s1312_s8 }
 0x356   :  { %658 = vrot.lane.b32.xlu2 %v1438_v25, %s1312_s8 }
 0x35b   :  { %837 = vrot.lane.b32.xlu1 %v1438_v25, %s1313_s14 }
 0x35e   :  { %804 = vrot.lane.b32.xlu2 %v1430_v22, %s1313_s14 }
 0x3a5   :  { %v522_v24 = vpop.xlane.xlu1 %521 }
 0x3a6   :  { %1082 = vrcp.f32 %v522_v24 }
 0x3ac   :  { %v1083_v27 = vpop.eup %1082 }
 0x3ad   :  { %v526_v28 = vmul.f32 %v1083_v27, %v1081_v18 }
 0x3ae   :  { %v1520_v50 = vpop.f32.mrf.mxu3 }
 0x3af   :  { %1027 = vmatmul.msk.f32.vlgmr.msra.gmra.mxu2 %vm333_vm2, %v526_v28 }
 0x3b1   :  { %v686_v29 = vpop.xlane.xlu2 %685 }
 0x3b2   :  { %v690_v30 = vsub.f32 %v651_v23, %v686_v29  ;;  %v614_v29 = vadd.f32 %v1520_v50, %v1511_v38 }
 0x3b4   :  { %v692_v32 = vmul.f32 1.442695, %v690_v30 }
 0x3b6   :  { %1084 = vpow2.f32 %v692_v32  ;;  %v1067_v32 = vld [vmem:[%s1564_s10] ss:$0 sm:$0xff] }
 0x3b9   :  { %v659_v33 = vpop.permute.xlu2 %658 }
 0x3ba   :  { %1032 = vmatpush.xpose.msk.msra.mxu1 %vm280_vm1, %v659_v33 }
 0x3bc   :  { %v1085_v34 = vpop.eup %1084 }
 0x3bd   :  { %v708_v35 = vpop.permute.xlu1 %707  ;;  %v696_v25 = vsel %vm333_vm2, %v1085_v34, 0.0 }
 0x3be   :  { %697 = vadd.xlane.f32.xlu0 %v696_v25  ;;  %728 = vmatpush.msrb.mxu2 %v708_v35 }
 0x3bf   :  { %784 = vmatpush.msrb.mxu1 %v761_v48 }
 0x3c0   :  { %1038 = vmatpush.xpose.msk.msra.mxu2 %vm280_vm1, %v808_v36 }
 0x3c1   :  { %v805_v45 = vpop.permute.xlu2 %804  ;;  %785 = vmatpush.msrb.mxu1 %v760_v49 }
 0x3c5   :  { %v656_v22 = vpop.permute.xlu1 %655 }
 0x3c6   :  { %1033 = vmatmul.msk.f32.vlgmr.msra.gmra.mxu1 %vm280_vm1, %v656_v22 }
 0x3cd   :  { %v838_v37 = vpop.permute.xlu1 %837 }
 0x3ce   :  { %1040 = vmatpush.xpose.msk.msra.mxu3 %vm280_vm1, %v838_v37 }
 0x3d2   :  { %834 = vrot.lane.b32.xlu0 %v1440_v26, %s1313_s14  ;;  %963 = vmatpush.msrb.mxu3 %v940_v13 }
 0x431   :  { %v698_v40 = vpop.xlane.xlu0 %697 }
 0x432   :  { %1086 = vrcp.f32 %v698_v40  ;;  %v578_v41 = vpop.f32.mrf.mxu2 }
 0x433   :  { %1029 = vmatmul.msk.f32.gmra.mxu3 %vm280_vm1, %v578_v41 }
 0x438   :  { %v1087_v42 = vpop.eup %1086 }
 0x439   :  { %v704_v43 = vmul.f32 %v1087_v42, %v1085_v34 }
 0x43b   :  { %1034 = vmatmul.msk.f32.vlgmr.msrb.gmra.mxu2 %vm333_vm2, %v704_v43 }
 0x443   :  { %v681_v46 = vpop.f32.mrf.mxu1  ;;  %1039 = vmatmul.msk.f32.vlgmr.msra.gmra.mxu2 %vm280_vm1, %v805_v45 }
 0x444   :  { %v835_v47 = vpop.permute.xlu0 %834  ;;  %v687_v26 = vsel %vm333_vm2, %v681_v46, -inf }
 0x445   :  { %688 = vmax.xlane.f32.xlu1 %v687_v26  ;;  %1041 = vmatmul.msk.f32.vlgmr.msra.gmra.mxu3 %vm280_vm1, %v835_v47 }
 0x4b6   :  { %v1523_v55 = vpop.f32.mrf.mxu3 }
 0x4b7   :  { %v615_v36 = vadd.f32 %v1523_v55, %v1514_v44 }
 0x4b8   :  { %v689_v51 = vpop.xlane.xlu1 %688 }
 0x4b9   :  { %v691_v52 = vsub.f32 %v681_v46, %v689_v51 }
 0x4bb   :  { %v694_v53 = vmul.f32 1.442695, %v691_v52 }
 0x4bd   :  { %1088 = vpow2.f32 %v694_v53 }
 0x4be   :  { %v730_v54 = vpop.f32.mrf.mxu2 }
 0x4bf   :  { %1036 = vmatmul.msk.f32.vlgmr.msrb.gmra.mxu1 %vm280_vm1, %v730_v54 }
 0x4c3   :  { %v1089_v56 = vpop.eup %1088 }
 0x4c4   :  { %v699_v57 = vsel %vm333_vm2, %v1089_v56, 0.0 }
 0x4c5   :  { %700 = vadd.xlane.f32.xlu1 %v699_v57 }
 0x4c6   :  { %v830_v58 = vpop.f32.mrf.mxu2 }
 0x4c7   :  { %v863_v59 = vsel %vm333_vm2, %v830_v58, -inf }
 0x4c8   :  { %864 = vmax.xlane.f32.xlu2 %v863_v59  ;;  %v860_v60 = vpop.f32.mrf.mxu3 }
 0x4c9   :  { %v866_v61 = vsel %vm333_vm2, %v860_v60, -inf }
 0x4ca   :  { %867 = vmax.xlane.f32.xlu0 %v866_v61 }
 0x4de   :  { %734 = vrot.lane.b32.xlu0 %v1464_v39, %s1312_s8  ;;  %v939_v39 = vld [vmem:[#allocation17 + $0x30] sm:$0xff] }
 0x4df   :  { %964 = vmatpush.msrb.mxu3 %v939_v39 }
 0x538   :  { %v701_v4 = vpop.xlane.xlu1 %700 }
 0x53b   :  { %v865_v62 = vpop.xlane.xlu2 %864 }
 0x53c   :  { %v869_v63 = vsub.f32 %v830_v58, %v865_v62  ;;  %v787_v28 = vpop.f32.mrf.mxu1 }
 0x53d   :  { %v868_v0 = vpop.xlane.xlu0 %867  ;;  %v793_v30 = vadd.f32 %v787_v28, %v614_v29 }
 0x53e   :  { %v871_v1 = vmul.f32 1.442695, %v869_v63  ;;  %v870_v2 = vsub.f32 %v860_v60, %v868_v0 }
 0x540   :  { %1090 = vpow2.f32 %v871_v1  ;;  %v873_v3 = vmul.f32 1.442695, %v870_v2 }
 0x542   :  { %1092 = vpow2.f32 %v873_v3 }
 0x543   :  { %1094 = vrcp.f32 %v701_v4 }
 0x546   :  { %v1091_v5 = vpop.eup %1090 }
 0x547   :  { %v875_v6 = vsel %vm333_vm2, %v1091_v5, 0.0 }
 0x548   :  { %v1093_v7 = vpop.eup %1092  ;;  %876 = vadd.xlane.f32.xlu2 %v875_v6 }
 0x549   :  { %v878_v8 = vsel %vm333_vm2, %v1093_v7, 0.0  ;;  %v1095_v9 = vpop.eup %1094 }
 0x54a   :  { %879 = vadd.xlane.f32.xlu1 %v878_v8  ;;  %v705_v10 = vmul.f32 %v1095_v9, %v1089_v56 }
 0x550   :  { %v735_v11 = vpop.permute.xlu0 %734 }
 0x551   :  { %755 = vmatpush.msrb.mxu0 %v735_v11 }
 0x552   :  { %1035 = vmatmul.msk.f32.vlgmr.msrb.gmra.mxu0 %vm333_vm2, %v705_v10 }
 0x560   :  { %1060 = vrot.lane.b32.xlu2 %v1059_v12, %s1313_s14 }
 0x5bb   :  { %v877_v14 = vpop.xlane.xlu2 %876 }
 0x5bc   :  { %1096 = vrcp.f32 %v877_v14 }
 0x5bd   :  { %v880_v15 = vpop.xlane.xlu1 %879 }
 0x5be   :  { %1098 = vrcp.f32 %v880_v15 }
 0x5c2   :  { %v1097_v16 = vpop.eup %1096 }
 0x5c3   :  { %v1061_v17 = vpop.permute.xlu2 %1060  ;;  %v883_v23 = vmul.f32 %v1097_v16, %v1091_v5 }
 0x5c4   :  { %v1099_v18 = vpop.eup %1098  ;;  %v1063_v19 = vunpack.i.h.bf16 %v1061_v17  ;;  %v1062_v20 = vunpack.i.l.bf16 %v1061_v17 }
 0x5c5   :  { %v884_v21 = vmul.f32 %v1099_v18, %v1093_v7 }
 0x5c6   :  { %907 = vmatpush.msra.mxu0 %v1062_v20  ;;  %934 = vmatpush.msrb.mxu2 %v1063_v19 }
 0x5c7   :  { %1042 = vmatmul.msk.f32.vlgmr.msra.gmra.mxu0 %vm333_vm2, %v883_v23  ;;  %1043 = vmatmul.msk.f32.vlgmr.msrb.gmra.mxu2 %vm333_vm2, %v884_v21 }
 0x5cf   :  { %v757_v31 = vpop.f32.mrf.mxu0 }
 0x5d0   :  { %1037 = vmatmul.msk.f32.gmra.mxu1 %vm280_vm1, %v757_v31 }
 0x644   :  { %v909_v24 = vpop.f32.mrf.mxu0 }
 0x645   :  { %1044 = vmatmul.msk.f32.vlgmr.msrb.gmra.mxu3 %vm280_vm1, %v909_v24 }
 0x64a   :  { %v936_v27 = vpop.f32.mrf.mxu2 }
 0x64d   :  { %1045 = vmatmul.msk.f32.gmra.mxu3 %vm280_vm1, %v936_v27  ;;  %v790_v25 = vpop.f32.mrf.mxu1 }
 0x64e   :  { %v794_v22 = vadd.f32 %v790_v25, %v615_v36 }
 0x6c8   :  { %v966_v33 = vpop.f32.mrf.mxu3 }
 0x6c9   :  { %v972_v34 = vadd.f32 %v966_v33, %v793_v30 }
 0x6cb   :  { %v982_v35 = vadd.f32 %v1067_v32, %v972_v34 }
 0x6cd   :  { %984 = vst [vmem:[#allocation18] sm:$0xff] %v982_v35 }
 0x6d0   :  { %v969_v37 = vpop.f32.mrf.mxu3 }
 0x6d1   :  { %v973_v38 = vadd.f32 %v969_v37, %v794_v22 }
 0x6d3   :  { %v983_v40 = vadd.f32 %v1067_v32, %v973_v38 }
 0x6d5   :  { %985 = vst [vmem:[#allocation18 + $0x8] sm:$0xff] %v983_v40 }
 0x6d6   :  { %998 = dma.vmem_to_hbm [thread:$0]  %s991_s17, 256, %s993_s0, [#allocation8], %s1303_s25, %s1303_s25, %s1304_s26  }
 0x6d7   :  { %1300 = dma.done.wait [#allocation8], 256  }
 0x6d8   :  { %1301 = vsyncadd [#allocation8], 4294967040 }
 0x6d9   :  { %1003 = vsyncpa [#allocation7], 1 }
 0x6da   :  { %1004 = vsyncpa [#allocation10], 1 }
 0x6db   :  { %1005 = vsyncpa [#allocation13], 1 }
 0x6dc   :  { %1006 = vsyncpa [#allocation16], 1 }
 0x6dd   :  { %1007 = vsyncpa [#allocation8], 1 }

</bundles_post_ra>
